<compile_context>
chip_gen: v5e
topology: v5e:2x2
jax: 0.10.0
libtpu: 0.0.40
codegen_flags: <defaults>
</compile_context>

<pallas_src>
import functools

import jax
import jax.numpy as jnp
from jax import lax
from jax.experimental import pallas as pl
from jax.experimental.pallas import tpu as pltpu


# ---------------------------------------------------------------------------
# Kernels
# ---------------------------------------------------------------------------

def _norm_kernel_3d(x_ref, g_ref, o_ref, *, eps, inv_c):
    """Block (TB, C, TL): reduce over C (sublane axis), TL on the lane axis."""
    x = x_ref[...]                                    # (TB, C, TL)
    xf = x.astype(jnp.float32)
    # One reduction pass: E[x], E[x^2]; variance clamped at 0 (cancellation guard).
    s = jnp.sum(xf, axis=1, keepdims=True)            # (TB, 1, TL)
    ss = jnp.sum(xf * xf, axis=1, keepdims=True)      # (TB, 1, TL)
    mean = s * inv_c
    var = jnp.maximum(ss * inv_c - mean * mean, 0.0)
    inv = lax.rsqrt(var + eps)                        # EUP rsqrt
    g = g_ref[...]                                    # (1, C, 1)
    if o_ref.dtype == jnp.float32:
        y = (xf - mean) * inv * g.astype(jnp.float32)
    else:
        # Stats in f32, big elementwise pass + store in the narrow dtype.
        cd = o_ref.dtype
        y = (x.astype(cd) - mean.astype(cd)) * inv.astype(cd) * g.astype(cd)
    o_ref[...] = y.astype(o_ref.dtype)


def _norm_kernel_2d(x_ref, g_ref, o_ref, *, eps, inv_c):
    """Block (C, TN): reduce over C (sublane axis), TN = flattened (B*L) lanes."""
    x = x_ref[...]                                    # (C, TN)
    xf = x.astype(jnp.float32)
    s = jnp.sum(xf, axis=0, keepdims=True)            # (1, TN)
    ss = jnp.sum(xf * xf, axis=0, keepdims=True)      # (1, TN)
    mean = s * inv_c
    var = jnp.maximum(ss * inv_c - mean * mean, 0.0)
    inv = lax.rsqrt(var + eps)
    g = g_ref[...]                                    # (C, 1)
    if o_ref.dtype == jnp.float32:
        y = (xf - mean) * inv * g.astype(jnp.float32)
    else:
        cd = o_ref.dtype
        y = (x.astype(cd) - mean.astype(cd)) * inv.astype(cd) * g.astype(cd)
    o_ref[...] = y.astype(o_ref.dtype)


# ---------------------------------------------------------------------------
# Tile-size / VMEM budgeting
# ---------------------------------------------------------------------------

_F32_TEMPS = 2               # ~2 full-block f32 temps live inside the kernel
_VMEM_BUDGET = 40 << 20      # block budget; conservative for v7x (64 MiB physical)


def _block_bytes(block_elems, itemsize):
    # 2 in + 2 out double-buffered blocks (I/O dtype) + in-kernel f32 temps.
    return block_elems * (4 * itemsize + _F32_TEMPS * 4)


def _vmem_limit(block_elems, itemsize):
    need = int(_block_bytes(block_elems, itemsize) * 1.25) + (4 << 20)
    # Above the default scoped limits (16 MiB v5e / 32 MiB v6e-v7x), but below
    # v7x's 64 MiB physical VMEM.
    return max(16 << 20, min(need, 48 << 20))


def _choose_tiles_3d(B, C, L, itemsize):
    """(TB, TL) for the L >= 128 path; TL is a multiple of 128."""
    tl = min(1024, pl.cdiv(L, 128) * 128)
    while tl > 128 and _block_bytes(C * tl, itemsize) > _VMEM_BUDGET:
        tl -= 128
    tb = 1
    while tb * 2 <= B and _block_bytes(tb * 2 * C * tl, itemsize) <= _VMEM_BUDGET:
        tb *= 2
    # Keep >= 2 grid steps along the parallel axes so both v7x TCs get work.
    if pl.cdiv(B, tb) * pl.cdiv(L, tl) < 2:
        if tb > 1:
            tb //= 2
        elif tl > 128:
            tl = max(128, ((tl // 2) // 128) * 128)
    return tb, tl


def _choose_tn_2d(C, N, itemsize):
    """TN for the L < 128 (flattened) path."""
    if N < 128:
        return N  # block equals the full array extent (allowed by the layout rule)
    tn = min(1024, pl.cdiv(N, 128) * 128)
    while tn > 128 and _block_bytes(C * tn, itemsize) > _VMEM_BUDGET:
        tn -= 128
    if pl.cdiv(N, tn) < 2 and tn > 128:               # >= 2 steps for megacore
        tn = max(128, ((tn // 2) // 128) * 128)
    return tn


# ---------------------------------------------------------------------------
# Wrapper
# ---------------------------------------------------------------------------

def layer_norm_pallas(x, g):
    """Channel-wise LayerNorm: x (B, C, L), g (1, C, 1) -> (B, C, L)."""
    B, C, L = x.shape
    assert g.shape == (1, C, 1), g.shape

    # PyTorch eps selection is based on the *input* dtype.
    eps = 1e-5 if x.dtype == jnp.float32 else 1e-3
    inv_c = 1.0 / C
    itemsize = jnp.dtype(x.dtype).itemsize

    cost = pl.CostEstimate(
        flops=8 * B * C * L,
        transcendentals=B * L,                               # one rsqrt per (b, l)
        bytes_accessed=2 * B * C * L * itemsize + C * jnp.dtype(g.dtype).itemsize,
    )

    if L >= 128:
        # ---- Path A: keep (B, C, L) layout, tile batch and L. ----
        TB, TL = _choose_tiles_3d(B, C, L, itemsize)
        grid = (pl.cdiv(B, TB), pl.cdiv(L, TL))
        # NOTE: ragged last blocks read out-of-bounds rows/lanes; this is safe
        # because the reduction is per (b, l) over C only, and OOB positions
        # are dropped on write.
        kernel = functools.partial(_norm_kernel_3d, eps=eps, inv_c=inv_c)
        return pl.pallas_call(
            kernel,
            out_shape=jax.ShapeDtypeStruct((B, C, L), x.dtype),
            grid_spec=pltpu.PrefetchScalarGridSpec(
                num_scalar_prefetch=0,
                grid=grid,
                in_specs=[
                    pl.BlockSpec((TB, C, TL), lambda i, j: (i, 0, j)),
                    pl.BlockSpec((1, C, 1), lambda i, j: (0, 0, 0)),   # g resident
                ],
                out_specs=pl.BlockSpec((TB, C, TL), lambda i, j: (i, 0, j)),
            ),
            compiler_params=pltpu.CompilerParams(
                dimension_semantics=("parallel", "parallel"),
                vmem_limit_bytes=_vmem_limit(TB * C * TL, itemsize),
            ),
            cost_estimate=cost,
        )(x, g)

    # ---- Path B (L < 128): 2-D (C, B*L) layout so the lane axis is B*L and
    # stores are lane-dense; the channel reduction runs over the sublane axis.
    N = B * L
    x2 = jnp.transpose(x, (1, 0, 2)).reshape(C, N)
    g2 = g.reshape(C, 1)
    TN = _choose_tn_2d(C, N, itemsize)
    grid = (pl.cdiv(N, TN),)
    kernel = functools.partial(_norm_kernel_2d, eps=eps, inv_c=inv_c)
    out2 = pl.pallas_call(
        kernel,
        out_shape=jax.ShapeDtypeStruct((C, N), x.dtype),
        grid_spec=pltpu.PrefetchScalarGridSpec(
            num_scalar_prefetch=0,
            grid=grid,
            in_specs=[
                pl.BlockSpec((C, TN), lambda j: (0, j)),
                pl.BlockSpec((C, 1), lambda j: (0, 0)),                # g resident
            ],
            out_specs=pl.BlockSpec((C, TN), lambda j: (0, j)),
        ),
        compiler_params=pltpu.CompilerParams(
            dimension_semantics=("parallel",),
            vmem_limit_bytes=_vmem_limit(C * TN, itemsize),
        ),
        cost_estimate=cost,
    )(x2, g2)
    return jnp.transpose(out2.reshape(C, B, L), (1, 0, 2))


def pre_norm(x, g, fn=None):
    """PreNorm.forward: fn(LayerNorm(x))."""
    y = layer_norm_pallas(x, g)
    # TODO(synk): fn is an arbitrary nn.Module (attention/MLP); in production,
    # fuse this norm as the prologue of that consumer's Pallas kernel to save
    # the extra HBM round trip of y.
    if fn is not None:
        y = fn(y)
    return y


def reference(x, g):
    """Pure-JAX reference matching the PyTorch LayerNorm semantics."""
    eps = 1e-5 if x.dtype == jnp.float32 else 1e-3
    xf = x.astype(jnp.float32)
    gf = g.astype(jnp.float32)
    mean = jnp.mean(xf, axis=1, keepdims=True)
    var = jnp.mean(jnp.square(xf - mean), axis=1, keepdims=True)
    return ((xf - mean) * lax.rsqrt(var + eps) * gf).astype(x.dtype)


if __name__ == "__main__":
    key = jax.random.PRNGKey(0)
    k_x, k_g, k_x2 = jax.random.split(key, 3)

    # Primary small shape consistent with the module: (batch, dim, sequence).
    B, C, L = 2, 32, 16
    x = jax.random.normal(k_x, (B, C, L), dtype=jnp.float32)
    # nn.Parameter(torch.ones(1, dim, 1)) analogue; perturbed so the g path is
    # actually exercised.
    g = 1.0 + 0.1 * jax.random.normal(k_g, (1, C, 1), dtype=jnp.float32)

    out = jax.block_until_ready(pre_norm(x, g))        # fn = identity here
    ref = reference(x, g)
    assert out.shape == (B, C, L), out.shape
    assert jnp.allclose(out, ref, atol=1e-4, rtol=1e-4), (
        float(jnp.max(jnp.abs(out - ref)))
    )

    # Secondary check: bf16 input with L >= 128 exercises the tiled
    # (TB, C, TL) path and the bf16 elementwise/store path.
    B2, C2, L2 = 2, 32, 256
    xb = jax.random.normal(k_x2, (B2, C2, L2), dtype=jnp.float32).astype(jnp.bfloat16)
    outb = jax.block_until_ready(pre_norm(xb, g))
    refb = reference(xb, g)
    assert outb.shape == (B2, C2, L2), outb.shape
    assert jnp.allclose(
        outb.astype(jnp.float32), refb.astype(jnp.float32), atol=5e-2, rtol=5e-2
    ), float(jnp.max(jnp.abs(outb.astype(jnp.float32) - refb.astype(jnp.float32))))

    print("KERNEL_OK")
</pallas_src>

<mosaic_0001>
module attributes {stable_mosaic.version = 11 : i64} {
  func.func @_norm_kernel_2d(%arg0: i32, %arg1: memref<32x32xf32, #tpu.memory_space<vmem>>, %arg2: memref<32x1xf32, #tpu.memory_space<vmem>>, %arg3: memref<32x32xf32, #tpu.memory_space<vmem>>) attributes {dimension_semantics = [#tpu.dimension_semantics<parallel>], iteration_bounds = array<i64: 1>, scalar_prefetch = 0 : i64, scratch_operands = 0 : i64, tpu.core_type = #tpu.core_type<tc>, window_params = [{transform_indices = @transform_0, window_bounds = array<i64: 32, 32>}, {pipeline_mode = #tpu.pipeline_mode<synchronous>, transform_indices = @transform_1, window_bounds = array<i64: 32, 1>}, {transform_indices = @transform_2, window_bounds = array<i64: 32, 32>}]} {
    %c0 = arith.constant 0 : index
    %c0_0 = arith.constant 0 : index
    %0 = vector.load %arg1[%c0, %c0_0] : memref<32x32xf32, #tpu.memory_space<vmem>>, vector<32x32xf32>
    %cst = arith.constant dense<0.000000e+00> : vector<32xf32>
    %1 = vector.multi_reduction <add>, %0, %cst [0] : vector<32x32xf32> to vector<32xf32>
    %2 = vector.shape_cast %1 : vector<32xf32> to vector<1x32xf32>
    %3 = arith.mulf %0, %0 : vector<32x32xf32>
    %cst_1 = arith.constant dense<0.000000e+00> : vector<32xf32>
    %4 = vector.multi_reduction <add>, %3, %cst_1 [0] : vector<32x32xf32> to vector<32xf32>
    %5 = vector.shape_cast %4 : vector<32xf32> to vector<1x32xf32>
    %cst_2 = arith.constant 3.125000e-02 : f32
    %6 = vector.broadcast %cst_2 : f32 to vector<1x32xf32>
    %7 = arith.mulf %2, %6 : vector<1x32xf32>
    %cst_3 = arith.constant 3.125000e-02 : f32
    %8 = vector.broadcast %cst_3 : f32 to vector<1x32xf32>
    %9 = arith.mulf %5, %8 : vector<1x32xf32>
    %10 = arith.mulf %7, %7 : vector<1x32xf32>
    %11 = arith.subf %9, %10 : vector<1x32xf32>
    %cst_4 = arith.constant 0.000000e+00 : f32
    %12 = vector.broadcast %cst_4 : f32 to vector<1x32xf32>
    %13 = arith.maximumf %11, %12 : vector<1x32xf32>
    %cst_5 = arith.constant 9.99999974E-6 : f32
    %14 = vector.broadcast %cst_5 : f32 to vector<1x32xf32>
    %15 = arith.addf %13, %14 : vector<1x32xf32>
    %16 = math.rsqrt %15 : vector<1x32xf32>
    %c0_6 = arith.constant 0 : index
    %c0_7 = arith.constant 0 : index
    %17 = vector.load %arg2[%c0_6, %c0_7] : memref<32x1xf32, #tpu.memory_space<vmem>>, vector<32x1xf32>
    %18 = vector.broadcast %7 : vector<1x32xf32> to vector<32x32xf32>
    %19 = arith.subf %0, %18 : vector<32x32xf32>
    %20 = vector.broadcast %16 : vector<1x32xf32> to vector<32x32xf32>
    %21 = arith.mulf %19, %20 : vector<32x32xf32>
    %22 = vector.broadcast %17 : vector<32x1xf32> to vector<32x32xf32>
    %23 = arith.mulf %21, %22 : vector<32x32xf32>
    %c0_8 = arith.constant 0 : index
    %c0_9 = arith.constant 0 : index
    %24 = vector.load %arg3[%c0_8, %c0_9] : memref<32x32xf32, #tpu.memory_space<vmem>>, vector<32x32xf32>
    tpu.vector_store %arg3[%c0_8, %c0_9], %23 {strides = array<i32>} : memref<32x32xf32, #tpu.memory_space<vmem>>, vector<32x32xf32>,
    return
  }
  func.func @transform_0(%arg0: i32) -> (i32, i32) {
    %c0_i32 = arith.constant 0 : i32
    %c0_i32_0 = arith.constant 0 : i32
    return %c0_i32, %arg0 : i32, i32
  }
  func.func @transform_1(%arg0: i32) -> (i32, i32) {
    %c0_i32 = arith.constant 0 : i32
    %c0_i32_0 = arith.constant 0 : i32
    %c0_i32_1 = arith.constant 0 : i32
    return %c0_i32, %c0_i32_0 : i32, i32
  }
  func.func @transform_2(%arg0: i32) -> (i32, i32) {
    %c0_i32 = arith.constant 0 : i32
    %c0_i32_0 = arith.constant 0 : i32
    return %c0_i32, %arg0 : i32, i32
  }
}

</mosaic_0001>

<bundles_post_ra>
// kernel: tpu_custom_call.1
= control target key start
LH: loop header
LB: loop body
LE: loop exit
PB: predicated region body
PF: predicated region fallthrough
CT: control target
= control target key end

     0   :  { %v155_v2 = vmov 0   ;;  %s219_s0 = inlined_call_operand.vmem [shape: f32[32,32], index: 0, kind: input, shape index: {}]   ;;  %s220_s1 = inlined_call_operand.vmem [shape: f32[32,1], index: 1, kind: input, shape index: {}]   ;;  %s221_s2 = inlined_call_operand.hbm [shape: f32[32,32], index: 2, kind: output, shape index: {}]  }
   0x1   :  { %v65_v0 = vld [vmem:[%s220_s1 + $0x10] sm:$0xff]  ;;  %v63_v1 = vld [vmem:[%s220_s1] sm:$0xff]  ;;  %126 = vset.pattern.permute.xlu1 %v155_v2  ;;  %125 = vset.pattern.permute.xlu0 %v155_v2 }
   0x2   :  { %7 = vsyncpa [#allocation3], 0  ;;  %87 = vperm.xlu1 %126, %v65_v0   ;;  %77 = vperm.xlu0 %125, %v63_v1   ;;  %v66_v3 = vld [vmem:[%s220_s1 + $0x18] sm:$0xff]  ;;  %v64_v4 = vld [vmem:[%s220_s1 + $0x8] sm:$0xff]  ;;  %vm16_vm0 = vcmask 261120   ;;  %s109_s27 = sshll.u32 %s221_s2, 4  ;;  %s110_s27 = int_to_ptr.hbm [resolvable:$true] %s109_s27 }
   0x3   :  { %v12_v5 = vld [vmem:[%s219_s0] sm:$0xff]  ;;  %v192_v6 = vld [vmem:[%s219_s0 + $0x8] sm:$0xff]  ;;  %v14_v11 = vld [vmem:[%s219_s0 + $0x10] sm:$0xff]  ;;  %s157_s28 = smov 128   ;;  %s158_s29 = smov 8  }
   0x4   :  { %v17_v7 = vsel %vm16_vm0, %v12_v5, 0.0  ;;  %v18_v8 = vsel %vm16_vm0, %v192_v6, 0.0  ;;  %v30_v9 = vmul.f32 %v12_v5, %v12_v5  ;;  %v31_v10 = vmul.f32 %v192_v6, %v192_v6  ;;  %v15_v17 = vld [vmem:[%s219_s0 + $0x18] sm:$0xff]  ;;  %s156_s0 = smov [#allocation2]  }
   0x5   :  { %v19_v12 = vadd.f32 %v18_v8, %v17_v7  ;;  %v20_v13 = vsel %vm16_vm0, %v14_v11, 0.0  ;;  %v32_v14 = vmul.f32 %v14_v11, %v14_v11  ;;  %v22_v20 = vsel %vm16_vm0, %v15_v17, 0.0  ;;  %s107_s24 = sshll.u32 %s156_s0, 4  ;;  %s108_s24 = int_to_ptr.vmem [resolvable:$true] %s107_s24 }
   0x6   :  { %v34_v15 = vsel %vm16_vm0, %v30_v9, 0.0  ;;  %v35_v16 = vsel %vm16_vm0, %v31_v10, 0.0  ;;  %v33_v21 = vmul.f32 %v15_v17, %v15_v17 }
   0x7   :  { %v21_v18 = vadd.f32 %v20_v13, %v19_v12  ;;  %v36_v19 = vadd.f32 %v35_v16, %v34_v15  ;;  %v37_v22 = vsel %vm16_vm0, %v32_v14, 0.0 }
   0x8   :  { %v39_v25 = vsel %vm16_vm0, %v33_v21, 0.0 }
   0x9   :  { %v23_v23 = vadd.f32 %v22_v20, %v21_v18  ;;  %v38_v24 = vadd.f32 %v37_v22, %v36_v19 }
   0xa   :  { %92 = vperm.xlu1 %126, %v66_v3   ;;  %82 = vperm.xlu0 %125, %v64_v4  }
   0xb   :  { %v24_v26 = vrot.slane %v23_v23, 4  ;;  %v40_v27 = vadd.f32 %v39_v25, %v38_v24 }
   0xd   :  { %v25_v28 = vadd.f32 %v24_v26, %v23_v23  ;;  %v41_v29 = vrot.slane %v40_v27, 4 }
   0xf   :  { %v26_v30 = vrot.slane %v25_v28, 2  ;;  %v42_v31 = vadd.f32 %v41_v29, %v40_v27 }
  0x11   :  { %v27_v32 = vadd.f32 %v26_v30, %v25_v28  ;;  %v43_v33 = vrot.slane %v42_v31, 2 }
  0x13   :  { %v28_v34 = vrot.slane %v27_v32, 1  ;;  %v44_v35 = vadd.f32 %v43_v33, %v42_v31 }
  0x15   :  { %v29_v36 = vadd.f32 %v28_v34, %v27_v32  ;;  %v45_v37 = vrot.slane %v44_v35, 1 }
  0x17   :  { %v46_v38 = vadd.f32 %v45_v37, %v44_v35  ;;  %v47_v39 = vmul.f32 0.03125, %v29_v36 }
  0x19   :  { %v48_v40 = vmul.f32 0.03125, %v46_v38  ;;  %v49_v41 = vmul.f32 %v47_v39, %v47_v39  ;;  %v69_v51 = vsub.f32 %v14_v11, %v47_v39  ;;  %v67_v52 = vsub.f32 %v12_v5, %v47_v39 }
  0x1a   :  { %v70_v60 = vsub.f32 %v15_v17, %v47_v39  ;;  %v68_v61 = vsub.f32 %v192_v6, %v47_v39 }
  0x1b   :  { %v50_v42 = vsub.f32 %v48_v40, %v49_v41 }
  0x1d   :  { %v51_v43 = vmax.f32 %v50_v42, 0.0 }
  0x1f   :  { %v52_v44 = vadd.f32 1e-05, %v51_v43 }
  0x21   :  { %127 = vrsqrt.f32 %v52_v44  ;;  %vm59_vm1 = vweird.f32 %v52_v44 }
  0x27   :  { %v128_v45 = vpop.eup %127 }
  0x28   :  { %v54_v46 = vmul.f32 %v128_v45, %v52_v44  ;;  %vm60_vm2 = vweird.f32 %v128_v45 }
  0x29   :  { %vm61_vm3 = vmor %vm59_vm1, %vm60_vm2 }
  0x2a   :  { %v55_v47 = vmul.f32 %v128_v45, %v54_v46 }
  0x2c   :  { %v56_v48 = vmul.f32 0.5, %v55_v47 }
  0x2e   :  { %v57_v49 = vsub.f32 1.5, %v56_v48 }
  0x30   :  { %v58_v50 = vmul.f32 %v128_v45, %v57_v49 }
  0x32   :  { %v62_v53 = vsel %vm61_vm3, %v128_v45, %v58_v50 }
  0x33   :  { %v73_v54 = vmul.f32 %v69_v51, %v62_v53  ;;  %v71_v55 = vmul.f32 %v67_v52, %v62_v53  ;;  %v74_v62 = vmul.f32 %v70_v60, %v62_v53  ;;  %v72_v63 = vmul.f32 %v68_v61, %v62_v53 }
  0x74   :  { %v88_v56 = vpop.permute.xlu1 %87  ;;  %v78_v57 = vpop.permute.xlu0 %77 }
  0x75   :  { %v97_v58 = vmul.f32 %v88_v56, %v73_v54  ;;  %v95_v59 = vmul.f32 %v78_v57, %v71_v55 }
  0x77   :  { %101 = vst.msk [vmem:[#allocation2 + $0x10] sm:$0xff] %vm16_vm0, %v97_v58 }
  0x78   :  { %99 = vst.msk [vmem:[#allocation2] sm:$0xff] %vm16_vm0, %v95_v59 }
  0x7c   :  { %v93_v0 = vpop.permute.xlu1 %92  ;;  %v83_v1 = vpop.permute.xlu0 %82 }
  0x7d   :  { %v98_v2 = vmul.f32 %v93_v0, %v74_v62  ;;  %v96_v3 = vmul.f32 %v83_v1, %v72_v63 }
  0x7f   :  { %102 = vst.msk [vmem:[#allocation2 + $0x18] sm:$0xff] %vm16_vm0, %v98_v2 }
  0x80   :  { %100 = vst.msk [vmem:[#allocation2 + $0x8] sm:$0xff] %vm16_vm0, %v96_v3 }
  0x81   :  { %115 = dma.vmem_to_hbm [thread:$0]  %s108_s24, 512, %s110_s27, [#allocation3], %s157_s28, %s157_s28, %s158_s29  }
  0x82   :  { %153 = dma.done.wait [#allocation3], 512  }
  0x83   :  { %154 = vsyncadd [#allocation3], 4294966784 }
  0x84   :  { %120 = vsyncpa [#allocation3], 1 }

</bundles_post_ra>
